<compile_context>
chip_gen: v6e
topology: v6e:2x2x1
jax: 0.10.0
libtpu: 0.0.40
codegen_flags: <defaults>
</compile_context>

<pallas_src>
import math
import jax
import jax.numpy as jnp
from jax.experimental import pallas as pl
from jax.experimental.pallas import tpu as pltpu

# ---- model hyperparameters (synthetic, deterministic) ----
D_IN = 32
D_OUT = 32
NUM_HEADS = 4
HEAD_DIM = D_OUT // NUM_HEADS
CONTEXT_LENGTH = 8
DROPOUT = 0.0  # p=0.0 -> identity (eval semantics)
# TODO(synk): dropout with p>0 (training mode) would need pltpu.prng_* in-kernel; omitted since p=0.0.

NEG_BIG = -1e30       # additive mask bias (finite -> no -inf/NaN propagation risk)
MAX_FOLD_ROWS = 128   # cap on R = batch_block * T folded into one (R,R) score block


def mha_kernel(x_ref, w_ref, bo_ref, mask_ref, o_ref):
    Bb, T, d_in = x_ref.shape            # Bb = batch elements handled by this grid step
    d_out = o_ref.shape[-1]
    R = Bb * T                           # rows for all matmuls (batch folded into rows)

    # flatten (batch, tokens) -> rows; lane dim unchanged (tiling-aligned, cheap)
    x = x_ref[...].reshape(R, d_in)

    # fused projection: one MXU pass producing [Q*scale | K | V@Wo per head]
    qkv = jnp.dot(x, w_ref[...], preferred_element_type=jnp.float32)   # (R, 2*d_out + H*d_out)

    mask_bias = mask_ref[...]            # host-precomputed (R, R) additive mask

    # seed the accumulator with the out_proj bias; per-head contributions added below
    acc = jnp.broadcast_to(bo_ref[...].astype(jnp.float32), (R, d_out))

    # Heads processed in a static unrolled loop on 8-lane column slices.
    # TODO(synk): a fully head-batched (H,T,hd) contraction would drop these lane slices,
    # but it needs a lane->sublane relayout that Mosaic does not reliably lower.
    for h in range(NUM_HEADS):
        lo = h * HEAD_DIM
        qh = qkv[:, lo:lo + HEAD_DIM]                         # (R, hd), already scaled
        kh = qkv[:, d_out + lo:d_out + lo + HEAD_DIM]         # (R, hd)
        vh = qkv[:, 2 * d_out + h * d_out:2 * d_out + (h + 1) * d_out]  # (R, d_out), Wo folded in

        # NT contraction: contract dim 1 of both -> no materialized kh.T / XLU transpose
        s = jax.lax.dot_general(qh, kh, (((1,), (1,)), ((), ())),
                                preferred_element_type=jnp.float32) + mask_bias   # (R, R)

        # numerically-stable softmax along keys (masked entries -> exactly 0)
        m = jnp.max(s, axis=-1, keepdims=True)
        e = jnp.exp(s - m)
        denom = jnp.sum(e, axis=-1, keepdims=True)
        inv = pl.reciprocal(denom, approx=False)              # exact; EUP has slack anyway

        if R > 32:
            # normalize AFTER P.V: scale the (R, d_out) result instead of the (R, R) weights
            acc = acc + jnp.dot(e, vh, preferred_element_type=jnp.float32) * inv
        else:
            acc = acc + jnp.dot(e * inv, vh, preferred_element_type=jnp.float32)

    o_ref[...] = acc.reshape(Bb, T, d_out).astype(o_ref.dtype)


def _tensorcores_per_chip() -> int:
    """v5e/v6e have 1 TensorCore per chip; v7x has 2."""
    try:
        kind = jax.devices()[0].device_kind.lower()
    except Exception:
        return 1
    return 2 if any(tag in kind for tag in ("v7", "7x")) else 1


def _choose_batch_block(B: int, T: int, n_cores: int) -> int:
    """Largest divisor of B giving one slab per core while keeping R = bb*T <= MAX_FOLD_ROWS."""
    cap = max(1, MAX_FOLD_ROWS // T)
    target = min(max(1, pl.cdiv(B, n_cores)), cap)
    for bb in range(target, 0, -1):
        if B % bb == 0:
            return bb
    return 1


def multi_head_attention(x, wq, wk, wv, wo, bo):
    B, T, d_in = x.shape
    d_out = wq.shape[1]
    assert T <= CONTEXT_LENGTH
    assert d_out % NUM_HEADS == 0

    # ---- host-side weight prep (free): fold scale into Wq, fold Wo into per-head Wv ----
    scale = 1.0 / math.sqrt(HEAD_DIM)
    vproj = jnp.concatenate(
        [wv[:, h * HEAD_DIM:(h + 1) * HEAD_DIM] @ wo[h * HEAD_DIM:(h + 1) * HEAD_DIM, :]
         for h in range(NUM_HEADS)], axis=1)                       # (d_in, H*d_out)
    w_fused = jnp.concatenate([wq * scale, wk, vproj], axis=1)     # (d_in, 2*d_out + H*d_out)
    bo2 = bo.reshape(1, d_out)

    # ---- grid / fold sizing (per TensorCore count, capped so (R,R) buffers stay small) ----
    bb = _choose_batch_block(B, T, _tensorcores_per_chip())
    R = bb * T
    grid = (B // bb,)

    # ---- host-precomputed additive mask: valid <=> same batch element AND causal ----
    row = jnp.arange(R)[:, None]
    col = jnp.arange(R)[None, :]
    valid = jnp.logical_and(row // T == col // T, col <= row)
    mask_bias = jnp.where(valid, 0.0, NEG_BIG).astype(jnp.float32)  # (R, R)

    w_shape = w_fused.shape

    return pl.pallas_call(
        mha_kernel,
        out_shape=jax.ShapeDtypeStruct((B, T, d_out), x.dtype),
        grid=grid,
        in_specs=[
            pl.BlockSpec((bb, T, d_in), lambda g: (g, 0, 0)),
            pl.BlockSpec(w_shape, lambda g: (0, 0)),
            pl.BlockSpec((1, d_out), lambda g: (0, 0)),
            pl.BlockSpec((R, R), lambda g: (0, 0)),
        ],
        out_specs=pl.BlockSpec((bb, T, d_out), lambda g: (g, 0, 0)),
        compiler_params=pltpu.CompilerParams(
            dimension_semantics=("parallel",)),
    )(x, w_fused, bo2, mask_bias)


def reference_mha(x, wq, wk, wv, wo, bo):
    B, T, _ = x.shape
    q = x @ wq
    k = x @ wk
    v = x @ wv
    q = q.reshape(B, T, NUM_HEADS, HEAD_DIM).transpose(0, 2, 1, 3)
    k = k.reshape(B, T, NUM_HEADS, HEAD_DIM).transpose(0, 2, 1, 3)
    v = v.reshape(B, T, NUM_HEADS, HEAD_DIM).transpose(0, 2, 1, 3)
    scores = jnp.einsum("bhqd,bhkd->bhqk", q, k)
    mask = jnp.triu(jnp.ones((T, T), dtype=bool), k=1)
    scores = jnp.where(mask[None, None], -jnp.inf, scores)
    w = jax.nn.softmax(scores / math.sqrt(HEAD_DIM), axis=-1)
    ctx = jnp.einsum("bhqk,bhkd->bhqd", w, v)
    ctx = ctx.transpose(0, 2, 1, 3).reshape(B, T, D_OUT)
    return ctx @ wo + bo


if __name__ == "__main__":
    key = jax.random.PRNGKey(0)
    k_x, k_q, k_k, k_v, k_o, k_b = jax.random.split(key, 6)

    B, T = 2, CONTEXT_LENGTH
    x = jax.random.normal(k_x, (B, T, D_IN), dtype=jnp.float32)

    # deterministic parameter init (roughly uniform(-1/sqrt(fan_in), +))
    sq = 1.0 / math.sqrt(D_IN)
    so = 1.0 / math.sqrt(D_OUT)
    wq = jax.random.uniform(k_q, (D_IN, D_OUT), minval=-sq, maxval=sq, dtype=jnp.float32)
    wk = jax.random.uniform(k_k, (D_IN, D_OUT), minval=-sq, maxval=sq, dtype=jnp.float32)
    wv = jax.random.uniform(k_v, (D_IN, D_OUT), minval=-sq, maxval=sq, dtype=jnp.float32)
    wo = jax.random.uniform(k_o, (D_OUT, D_OUT), minval=-so, maxval=so, dtype=jnp.float32)
    bo = jax.random.uniform(k_b, (1, D_OUT), minval=-so, maxval=so, dtype=jnp.float32)

    out = multi_head_attention(x, wq, wk, wv, wo, bo)
    out = jax.block_until_ready(out)

    ref = reference_mha(x, wq, wk, wv, wo, bo)
    assert out.shape == (B, T, D_OUT)
    max_err = float(jnp.max(jnp.abs(out - ref)))
    # f32 everywhere + exact reciprocal; remaining error is only accumulation-order noise
    # from the host-side Wv@Wo fold and per-head out-proj accumulation.
    assert jnp.allclose(out, ref, atol=1e-4, rtol=1e-4), f"mismatch vs reference (max|err|={max_err})"

    print("KERNEL_OK")
</pallas_src>

<mosaic_0001>
module attributes {stable_mosaic.version = 11 : i64} {
  func.func @mha_kernel(%arg0: i32, %arg1: memref<2x8x32xf32, #tpu.memory_space<vmem>>, %arg2: memref<32x192xf32, #tpu.memory_space<vmem>>, %arg3: memref<1x32xf32, #tpu.memory_space<vmem>>, %arg4: memref<16x16xf32, #tpu.memory_space<vmem>>, %arg5: memref<2x8x32xf32, #tpu.memory_space<vmem>>) attributes {dimension_semantics = [#tpu.dimension_semantics<parallel>], iteration_bounds = array<i64: 1>, scalar_prefetch = 0 : i64, scratch_operands = 0 : i64, tpu.core_type = #tpu.core_type<tc>, window_params = [{transform_indices = @transform_0, window_bounds = array<i64: 2, 8, 32>}, {pipeline_mode = #tpu.pipeline_mode<synchronous>, transform_indices = @transform_1, window_bounds = array<i64: 32, 192>}, {pipeline_mode = #tpu.pipeline_mode<synchronous>, transform_indices = @transform_2, window_bounds = array<i64: 1, 32>}, {pipeline_mode = #tpu.pipeline_mode<synchronous>, transform_indices = @transform_3, window_bounds = array<i64: 16, 16>}, {transform_indices = @transform_4, window_bounds = array<i64: 2, 8, 32>}]} {
    %c0 = arith.constant 0 : index
    %c0_0 = arith.constant 0 : index
    %c0_1 = arith.constant 0 : index
    %0 = vector.load %arg1[%c0, %c0_0, %c0_1] : memref<2x8x32xf32, #tpu.memory_space<vmem>>, vector<2x8x32xf32>
    %1 = vector.shape_cast %0 : vector<2x8x32xf32> to vector<16x32xf32>
    %c0_2 = arith.constant 0 : index
    %c0_3 = arith.constant 0 : index
    %2 = vector.load %arg2[%c0_2, %c0_3] : memref<32x192xf32, #tpu.memory_space<vmem>>, vector<32x192xf32>
    %cst = arith.constant dense<0.000000e+00> : vector<16x192xf32>
    %3 = tpu.matmul %1, %2, %cst {dimension_numbers = #tpu.dot_dimension_numbers<[1], [0], [0], [1], [0, 0, 1, 1], [], []>} : vector<16x32xf32>, vector<32x192xf32>, vector<16x192xf32> -> vector<16x192xf32>
    %c0_4 = arith.constant 0 : index
    %c0_5 = arith.constant 0 : index
    %4 = vector.load %arg4[%c0_4, %c0_5] : memref<16x16xf32, #tpu.memory_space<vmem>>, vector<16x16xf32>
    %c0_6 = arith.constant 0 : index
    %c0_7 = arith.constant 0 : index
    %5 = vector.load %arg3[%c0_6, %c0_7] : memref<1x32xf32, #tpu.memory_space<vmem>>, vector<1x32xf32>
    %6 = vector.shape_cast %5 : vector<1x32xf32> to vector<1x32xf32>
    %7 = vector.broadcast %6 : vector<1x32xf32> to vector<16x32xf32>
    %8 = vector.extract_strided_slice %3 {offsets = [0, 0], sizes = [16, 8], strides = [1, 1]} : vector<16x192xf32> to vector<16x8xf32>
    %9 = vector.extract_strided_slice %3 {offsets = [0, 32], sizes = [16, 8], strides = [1, 1]} : vector<16x192xf32> to vector<16x8xf32>
    %10 = vector.extract_strided_slice %3 {offsets = [0, 64], sizes = [16, 32], strides = [1, 1]} : vector<16x192xf32> to vector<16x32xf32>
    %cst_8 = arith.constant dense<0.000000e+00> : vector<16x16xf32>
    %11 = tpu.matmul %8, %9, %cst_8 {dimension_numbers = #tpu.dot_dimension_numbers<[1], [1], [0], [0], [0, 0, 1, 0], [], []>} : vector<16x8xf32>, vector<16x8xf32>, vector<16x16xf32> -> vector<16x16xf32>
    %12 = arith.addf %11, %4 : vector<16x16xf32>
    %cst_9 = arith.constant dense<0xFF800000> : vector<16xf32>
    %13 = vector.multi_reduction <maximumf>, %12, %cst_9 [1] : vector<16x16xf32> to vector<16xf32>
    %14 = vector.shape_cast %13 : vector<16xf32> to vector<16x1xf32>
    %15 = vector.broadcast %14 : vector<16x1xf32> to vector<16x16xf32>
    %16 = arith.subf %12, %15 : vector<16x16xf32>
    %17 = math.exp %16 : vector<16x16xf32>
    %cst_10 = arith.constant dense<0.000000e+00> : vector<16xf32>
    %18 = vector.multi_reduction <add>, %17, %cst_10 [1] : vector<16x16xf32> to vector<16xf32>
    %19 = vector.shape_cast %18 : vector<16xf32> to vector<16x1xf32>
    %20 = tpu.reciprocal %19 : vector<16x1xf32> -> vector<16x1xf32>
    %21 = vector.broadcast %20 : vector<16x1xf32> to vector<16x16xf32>
    %22 = arith.mulf %17, %21 : vector<16x16xf32>
    %cst_11 = arith.constant dense<0.000000e+00> : vector<16x32xf32>
    %23 = tpu.matmul %22, %10, %cst_11 {dimension_numbers = #tpu.dot_dimension_numbers<[1], [0], [0], [1], [0, 0, 1, 1], [], []>} : vector<16x16xf32>, vector<16x32xf32>, vector<16x32xf32> -> vector<16x32xf32>
    %24 = arith.addf %7, %23 : vector<16x32xf32>
    %25 = vector.extract_strided_slice %3 {offsets = [0, 8], sizes = [16, 8], strides = [1, 1]} : vector<16x192xf32> to vector<16x8xf32>
    %26 = vector.extract_strided_slice %3 {offsets = [0, 40], sizes = [16, 8], strides = [1, 1]} : vector<16x192xf32> to vector<16x8xf32>
    %27 = vector.extract_strided_slice %3 {offsets = [0, 96], sizes = [16, 32], strides = [1, 1]} : vector<16x192xf32> to vector<16x32xf32>
    %cst_12 = arith.constant dense<0.000000e+00> : vector<16x16xf32>
    %28 = tpu.matmul %25, %26, %cst_12 {dimension_numbers = #tpu.dot_dimension_numbers<[1], [1], [0], [0], [0, 0, 1, 0], [], []>} : vector<16x8xf32>, vector<16x8xf32>, vector<16x16xf32> -> vector<16x16xf32>
    %29 = arith.addf %28, %4 : vector<16x16xf32>
    %cst_13 = arith.constant dense<0xFF800000> : vector<16xf32>
    %30 = vector.multi_reduction <maximumf>, %29, %cst_13 [1] : vector<16x16xf32> to vector<16xf32>
    %31 = vector.shape_cast %30 : vector<16xf32> to vector<16x1xf32>
    %32 = vector.broadcast %31 : vector<16x1xf32> to vector<16x16xf32>
    %33 = arith.subf %29, %32 : vector<16x16xf32>
    %34 = math.exp %33 : vector<16x16xf32>
    %cst_14 = arith.constant dense<0.000000e+00> : vector<16xf32>
    %35 = vector.multi_reduction <add>, %34, %cst_14 [1] : vector<16x16xf32> to vector<16xf32>
    %36 = vector.shape_cast %35 : vector<16xf32> to vector<16x1xf32>
    %37 = tpu.reciprocal %36 : vector<16x1xf32> -> vector<16x1xf32>
    %38 = vector.broadcast %37 : vector<16x1xf32> to vector<16x16xf32>
    %39 = arith.mulf %34, %38 : vector<16x16xf32>
    %cst_15 = arith.constant dense<0.000000e+00> : vector<16x32xf32>
    %40 = tpu.matmul %39, %27, %cst_15 {dimension_numbers = #tpu.dot_dimension_numbers<[1], [0], [0], [1], [0, 0, 1, 1], [], []>} : vector<16x16xf32>, vector<16x32xf32>, vector<16x32xf32> -> vector<16x32xf32>
    %41 = arith.addf %24, %40 : vector<16x32xf32>
    %42 = vector.extract_strided_slice %3 {offsets = [0, 16], sizes = [16, 8], strides = [1, 1]} : vector<16x192xf32> to vector<16x8xf32>
    %43 = vector.extract_strided_slice %3 {offsets = [0, 48], sizes = [16, 8], strides = [1, 1]} : vector<16x192xf32> to vector<16x8xf32>
    %44 = vector.extract_strided_slice %3 {offsets = [0, 128], sizes = [16, 32], strides = [1, 1]} : vector<16x192xf32> to vector<16x32xf32>
    %cst_16 = arith.constant dense<0.000000e+00> : vector<16x16xf32>
    %45 = tpu.matmul %42, %43, %cst_16 {dimension_numbers = #tpu.dot_dimension_numbers<[1], [1], [0], [0], [0, 0, 1, 0], [], []>} : vector<16x8xf32>, vector<16x8xf32>, vector<16x16xf32> -> vector<16x16xf32>
    %46 = arith.addf %45, %4 : vector<16x16xf32>
    %cst_17 = arith.constant dense<0xFF800000> : vector<16xf32>
    %47 = vector.multi_reduction <maximumf>, %46, %cst_17 [1] : vector<16x16xf32> to vector<16xf32>
    %48 = vector.shape_cast %47 : vector<16xf32> to vector<16x1xf32>
    %49 = vector.broadcast %48 : vector<16x1xf32> to vector<16x16xf32>
    %50 = arith.subf %46, %49 : vector<16x16xf32>
    %51 = math.exp %50 : vector<16x16xf32>
    %cst_18 = arith.constant dense<0.000000e+00> : vector<16xf32>
    %52 = vector.multi_reduction <add>, %51, %cst_18 [1] : vector<16x16xf32> to vector<16xf32>
    %53 = vector.shape_cast %52 : vector<16xf32> to vector<16x1xf32>
    %54 = tpu.reciprocal %53 : vector<16x1xf32> -> vector<16x1xf32>
    %55 = vector.broadcast %54 : vector<16x1xf32> to vector<16x16xf32>
    %56 = arith.mulf %51, %55 : vector<16x16xf32>
    %cst_19 = arith.constant dense<0.000000e+00> : vector<16x32xf32>
    %57 = tpu.matmul %56, %44, %cst_19 {dimension_numbers = #tpu.dot_dimension_numbers<[1], [0], [0], [1], [0, 0, 1, 1], [], []>} : vector<16x16xf32>, vector<16x32xf32>, vector<16x32xf32> -> vector<16x32xf32>
    %58 = arith.addf %41, %57 : vector<16x32xf32>
    %59 = vector.extract_strided_slice %3 {offsets = [0, 24], sizes = [16, 8], strides = [1, 1]} : vector<16x192xf32> to vector<16x8xf32>
    %60 = vector.extract_strided_slice %3 {offsets = [0, 56], sizes = [16, 8], strides = [1, 1]} : vector<16x192xf32> to vector<16x8xf32>
    %61 = vector.extract_strided_slice %3 {offsets = [0, 160], sizes = [16, 32], strides = [1, 1]} : vector<16x192xf32> to vector<16x32xf32>
    %cst_20 = arith.constant dense<0.000000e+00> : vector<16x16xf32>
    %62 = tpu.matmul %59, %60, %cst_20 {dimension_numbers = #tpu.dot_dimension_numbers<[1], [1], [0], [0], [0, 0, 1, 0], [], []>} : vector<16x8xf32>, vector<16x8xf32>, vector<16x16xf32> -> vector<16x16xf32>
    %63 = arith.addf %62, %4 : vector<16x16xf32>
    %cst_21 = arith.constant dense<0xFF800000> : vector<16xf32>
    %64 = vector.multi_reduction <maximumf>, %63, %cst_21 [1] : vector<16x16xf32> to vector<16xf32>
    %65 = vector.shape_cast %64 : vector<16xf32> to vector<16x1xf32>
    %66 = vector.broadcast %65 : vector<16x1xf32> to vector<16x16xf32>
    %67 = arith.subf %63, %66 : vector<16x16xf32>
    %68 = math.exp %67 : vector<16x16xf32>
    %cst_22 = arith.constant dense<0.000000e+00> : vector<16xf32>
    %69 = vector.multi_reduction <add>, %68, %cst_22 [1] : vector<16x16xf32> to vector<16xf32>
    %70 = vector.shape_cast %69 : vector<16xf32> to vector<16x1xf32>
    %71 = tpu.reciprocal %70 : vector<16x1xf32> -> vector<16x1xf32>
    %72 = vector.broadcast %71 : vector<16x1xf32> to vector<16x16xf32>
    %73 = arith.mulf %68, %72 : vector<16x16xf32>
    %cst_23 = arith.constant dense<0.000000e+00> : vector<16x32xf32>
    %74 = tpu.matmul %73, %61, %cst_23 {dimension_numbers = #tpu.dot_dimension_numbers<[1], [0], [0], [1], [0, 0, 1, 1], [], []>} : vector<16x16xf32>, vector<16x32xf32>, vector<16x32xf32> -> vector<16x32xf32>
    %75 = arith.addf %58, %74 : vector<16x32xf32>
    %76 = vector.shape_cast %75 : vector<16x32xf32> to vector<2x8x32xf32>
    %c0_24 = arith.constant 0 : index
    %c0_25 = arith.constant 0 : index
    %c0_26 = arith.constant 0 : index
    %77 = vector.load %arg5[%c0_24, %c0_25, %c0_26] : memref<2x8x32xf32, #tpu.memory_space<vmem>>, vector<2x8x32xf32>
    tpu.vector_store %arg5[%c0_24, %c0_25, %c0_26], %76 {strides = array<i32>} : memref<2x8x32xf32, #tpu.memory_space<vmem>>, vector<2x8x32xf32>,
    return
  }
  func.func @transform_0(%arg0: i32) -> (i32, i32, i32) {
    %c0_i32 = arith.constant 0 : i32
    %c0_i32_0 = arith.constant 0 : i32
    %c0_i32_1 = arith.constant 0 : i32
    return %arg0, %c0_i32, %c0_i32_0 : i32, i32, i32
  }
  func.func @transform_1(%arg0: i32) -> (i32, i32) {
    %c0_i32 = arith.constant 0 : i32
    %c0_i32_0 = arith.constant 0 : i32
    %c0_i32_1 = arith.constant 0 : i32
    return %c0_i32, %c0_i32_0 : i32, i32
  }
  func.func @transform_2(%arg0: i32) -> (i32, i32) {
    %c0_i32 = arith.constant 0 : i32
    %c0_i32_0 = arith.constant 0 : i32
    %c0_i32_1 = arith.constant 0 : i32
    return %c0_i32, %c0_i32_0 : i32, i32
  }
  func.func @transform_3(%arg0: i32) -> (i32, i32) {
    %c0_i32 = arith.constant 0 : i32
    %c0_i32_0 = arith.constant 0 : i32
    %c0_i32_1 = arith.constant 0 : i32
    return %c0_i32, %c0_i32_0 : i32, i32
  }
  func.func @transform_4(%arg0: i32) -> (i32, i32, i32) {
    %c0_i32 = arith.constant 0 : i32
    %c0_i32_0 = arith.constant 0 : i32
    %c0_i32_1 = arith.constant 0 : i32
    return %arg0, %c0_i32, %c0_i32_0 : i32, i32, i32
  }
}

</mosaic_0001>

<bundles_post_ra>
// kernel: tpu_custom_call.1
= control target key start
LH: loop header
LB: loop body
LE: loop exit
PB: predicated region body
PF: predicated region fallthrough
CT: control target
= control target key end

     0   :  { %9 = vsyncpa [#allocation3], 0  ;;  %s1406_s0 = inlined_call_operand.hbm [shape: f32[2,8,32], index: 0, kind: input, shape index: {}]   ;;  %s1407_s1 = inlined_call_operand.hbm [shape: f32[32,192], index: 1, kind: input, shape index: {}]   ;;  %s1408_s2 = inlined_call_operand.vmem [shape: f32[1,32], index: 2, kind: input, shape index: {}]   ;;  %s1409_s3 = inlined_call_operand.hbm [shape: f32[16,16], index: 3, kind: input, shape index: {}]   ;;  %s1410_s4 = inlined_call_operand.hbm [shape: f32[2,8,32], index: 4, kind: output, shape index: {}]  }
   0x1   :  { %10 = vsyncpa [#allocation6], 0 }
   0x2   :  { %11 = vsyncpa [#allocation4], 0  ;;  %s1237_s15 = smov [#allocation5]  }
   0x3   :  { %s29_s16 = sshll.u32 %s1237_s15, 4  ;;  %s30_s16 = int_to_ptr.vmem [resolvable:$true] %s29_s16 }
   0x4   :  { %s1159_s17 = scalar_lea.vmem %s30_s16, 1024  ;;  %p1164_p1 = scmp.lt.s32.totalorder %s30_s16, %s30_s16 }
   0x5   :  { %p1160_p0 = scmp.ne.s32.totalorder %s30_s16, %s1159_s17  ;;  %p1165_p2 = scmp.lt.s32.totalorder %s1159_s17, %s1159_s17 }
   0x7   :  { %p1166_p3 = por %p1165_p2, %p1164_p1 }
   0x9   :  { %p1167_p4 = pnand %p1166_p3, %p1160_p0 }
   0xb   :  { %1170 = shalt.err (!%p1167_p4)
}
   0xc   :  { %s1238_s18 = smov 256   ;;  %s1239_s19 = smov 16  }
   0xd   :  { %35 = dma.hbm_to_vmem [thread:$0]  %s1407_s1, 1024, %s30_s16, [#allocation6], %s1238_s18, %s1238_s18, %s1239_s19  }
   0xe   :  { %s1240_s22 = smov [#allocation2]  }
   0xf   :  { %s17_s23 = sshll.u32 %s1240_s22, 4  ;;  %s18_s23 = int_to_ptr.vmem [resolvable:$true] %s17_s23 }
  0x10   :  { %s1179_s24 = scalar_lea.vmem %s18_s23, 256  ;;  %p1184_p6 = scmp.lt.s32.totalorder %s18_s23, %s18_s23 }
  0x11   :  { %p1180_p5 = scmp.ne.s32.totalorder %s18_s23, %s1179_s24  ;;  %p1185_p7 = scmp.lt.s32.totalorder %s1179_s24, %s1179_s24 }
  0x13   :  { %p1186_p8 = por %p1185_p7, %p1184_p6 }
  0x15   :  { %p1187_p9 = pnand %p1186_p8, %p1180_p5 }
  0x17   :  { %1190 = shalt.err (!%p1187_p9)
}
  0x18   :  { %s1241_s25 = smov 128   ;;  %s1242_s26 = smov 8  }
  0x19   :  { %23 = dma.hbm_to_vmem [thread:$0]  %s1406_s0, 256, %s18_s23, [#allocation3], %s1241_s25, %s1241_s25, %s1242_s26  }
  0x1a   :  { %s1243_s1 = smov [#allocation7]  }
  0x1b   :  { %s43_s29 = sshll.u32 %s1243_s1, 4  ;;  %s44_s29 = int_to_ptr.vmem [resolvable:$true] %s43_s29 }
  0x1c   :  { %s1199_s30 = scalar_lea.vmem %s44_s29, 256  ;;  %p1204_p11 = scmp.lt.s32.totalorder %s44_s29, %s44_s29 }
  0x1d   :  { %p1200_p10 = scmp.ne.s32.totalorder %s44_s29, %s1199_s30  ;;  %p1205_p12 = scmp.lt.s32.totalorder %s1199_s30, %s1199_s30 }
  0x1f   :  { %p1206_p13 = por %p1205_p12, %p1204_p11 }
  0x21   :  { %p1207_p0 = pnand %p1206_p13, %p1200_p10 }
  0x23   :  { %1210 = shalt.err (!%p1207_p0)
}
  0x24   :  { %49 = dma.hbm_to_vmem [thread:$0]  %s1409_s3, 256, %s44_s29, [#allocation6], %s1241_s25, %s1241_s25, %s1242_s26  }
  0x25   :  { %1231 = dma.done.wait [#allocation3], 256  }
  0x26   :  { %1232 = vsyncadd [#allocation3], 4294967040 }
  0x27   :  { %1233 = dma.done.wait [#allocation6], 1280  }
  0x28   :  { %1234 = vsyncadd [#allocation6], 4294966016  ;;  %v1244_v0 = vmov 0.0   ;;  %v68_v1 = vld [vmem:[#allocation5 + $0x38] sm:$0xff]  ;;  %v67_v2 = vld [vmem:[#allocation5 + $0x30] sm:$0xff]  ;;  %vm69_vm0 = vcmask 261120  }
  0x29   :  { %140 = vmatprep.mubr.f32.mxu0 %v1244_v0  ;;  %v66_v3 = vld [vmem:[#allocation5 + $0x28] sm:$0xff]  ;;  %100 = vmatprep.subr.mxu0 %v68_v1  ;;  %v65_v4 = vld [vmem:[#allocation5 + $0x20] sm:$0xff]  ;;  %v64_v5 = vld [vmem:[#allocation5 + $0x18] sm:$0xff]  ;;  %vm168_vm1 = vcmask 64512   ;;  %s1245_s0 = smov 96   ;;  %s1246_s3 = smov 88  }
  0x2a   :  { %101 = vmatpush1.msra.mxu0 %v67_v2  ;;  %v63_v6 = vld [vmem:[#allocation5 + $0x10] sm:$0xff]  ;;  %v62_v7 = vld [vmem:[#allocation5 + $0x8] sm:$0xff]  ;;  %v61_v8 = vld [vmem:[#allocation5] sm:$0xff]  ;;  %s1247_s7 = smov 80   ;;  %s1248_s8 = smov 120   ;;  %vm252_vm2 = vcmask 130048  }
  0x2b   :  { %102 = vmatprep.subr.mxu0 %v66_v3  ;;  %v59_v9 = vld [vmem:[#allocation2] sm:$0xff]  ;;  %v60_v10 = vld [vmem:[#allocation2 + $0x8] sm:$0xff]  ;;  %s1249_s9 = smov 112   ;;  %v1335_v24 = vld [vmem:[#allocation7 + $0x8] sm:$0xff]  ;;  %s1250_s10 = smov 64  }
  0x2c   :  { %103 = vmatpush1.msra.mxu0 %v65_v4  ;;  %v1337_v26 = vld [vmem:[#allocation7] sm:$0xff]  ;;  %s1251_s11 = smov 32   ;;  %s1252_s12 = smov 72  }
  0x2d   :  { %104 = vmatprep.subr.mxu0 %v64_v5  ;;  %s1253_s13 = smov 104  }
  0x2e   :  { %105 = vmatpush1.msra.mxu0 %v63_v6 }
  0x2f   :  { %106 = vmatprep.subr.mxu0 %v62_v7 }
  0x30   :  { %107 = vmatpush1.msra.mxu0 %v61_v8 }
  0x31   :  { %986 = vmatmul.mubr.msk.f32.vlgmr.msra.gmra.mxu0 %vm69_vm0, %v59_v9 }
  0x32   :  { %146 = vmatprep.mubr.f32.mxu0 %v1244_v0 }
  0x35   :  { %987 = vmatmul.mubr.msk.f32.gmra.mxu0 %vm69_vm0, %v60_v10 }
  0xf1   :  { %v1297_v11 = vpop.f32.mrf.mxu0 }
  0xf2   :  { %164 = vrot.lane.b32.xlu1 %v1297_v11, %s1245_s0  ;;  %1049 = vmatprep.mubr.msk.f32.mxu1 %vm168_vm1, %v1297_v11 }
  0xf3   :  { %v1303_v12 = vpop.f32.mrf.mxu0 }
  0xf5   :  { %v1305_v13 = vpop.f32.mrf.mxu0 }
  0xf6   :  { %368 = vrot.lane.b32.xlu1 %v1297_v11, %s1246_s3  ;;  %166 = vrot.lane.b32.xlu0 %v1305_v13, %s1245_s0 }
  0xf7   :  { %v1340_v28 = vpop.f32.mrf.mxu0 }
  0xfa   :  { %572 = vrot.lane.b32.xlu1 %v1305_v13, %s1247_s7  ;;  %370 = vrot.lane.b32.xlu0 %v1305_v13, %s1246_s3 }
  0xfe   :  { %570 = vrot.lane.b32.xlu1 %v1297_v11, %s1247_s7  ;;  %364 = vrot.lane.b32.xlu0 %v1297_v11, %s1248_s8 }
 0x102   :  { %568 = vrot.lane.b32.xlu1 %v1305_v13, %s1249_s9  ;;  %366 = vrot.lane.b32.xlu0 %v1305_v13, %s1248_s8 }
 0x106   :  { %566 = vrot.lane.b32.xlu0 %v1297_v11, %s1249_s9 }
 0x164   :  { %v165_v14 = vpop.permute.xlu1 %164 }
 0x168   :  { %v167_v15 = vpop.permute.xlu0 %166  ;;  %v369_v16 = vpop.permute.xlu1 %368 }
 0x169   :  { %1045 = vmatprep.subr.msk.mxu1 %vm168_vm1, %v167_v15 }
 0x16a   :  { %1046 = vmatpush3.xpose.msk.msra.mxu1 %vm168_vm1, %v167_v15 }
 0x16b   :  { %1047 = vmatprep.subr.msk.mxu1 %vm168_vm1, %v165_v14 }
 0x16c   :  { %v371_v17 = vpop.permute.xlu0 %370  ;;  %v573_v18 = vpop.permute.xlu1 %572 }
 0x16d   :  { %1059 = vmatprep.subr.msk.mxu0 %vm168_vm1, %v371_v17 }
 0x16e   :  { %1048 = vmatpush3.xpose.msk.msra.mxu1 %vm168_vm1, %v165_v14  ;;  %1060 = vmatpush3.xpose.msk.msra.mxu0 %vm168_vm1, %v371_v17 }
 0x16f   :  { %1061 = vmatprep.subr.msk.mxu0 %vm168_vm1, %v369_v16 }
 0x170   :  { %v365_v19 = vpop.permute.xlu0 %364  ;;  %v571_v21 = vpop.permute.xlu1 %570 }
 0x171   :  { %1050 = vmatmul.mubr.msk.f32.vlgmr.msra.gmra.mxu1 %vm168_vm1, %v1305_v13  ;;  %1063 = vmatprep.mubr.msk.f32.mxu0 %vm168_vm1, %v365_v19 }
 0x172   :  { %1062 = vmatpush3.xpose.msk.msra.mxu0 %vm168_vm1, %v369_v16 }
 0x173   :  { %1073 = vmatprep.subr.msk.mxu0 %vm168_vm1, %v573_v18 }
 0x174   :  { %v367_v20 = vpop.permute.xlu0 %366  ;;  %v569_v23 = vpop.permute.xlu1 %568 }
 0x175   :  { %1064 = vmatmul.mubr.msk.f32.vlgmr.msra.gmra.mxu0 %vm168_vm1, %v367_v20 }
 0x176   :  { %1074 = vmatpush3.xpose.msk.msra.mxu0 %vm168_vm1, %v573_v18 }
 0x177   :  { %1075 = vmatprep.subr.msk.mxu0 %vm168_vm1, %v571_v21 }
 0x178   :  { %v567_v22 = vpop.permute.xlu0 %566 }
 0x179   :  { %1077 = vmatprep.mubr.msk.f32.mxu0 %vm168_vm1, %v567_v22 }
 0x17a   :  { %1076 = vmatpush3.xpose.msk.msra.mxu0 %vm168_vm1, %v571_v21 }
 0x17d   :  { %1078 = vmatmul.mubr.msk.f32.vlgmr.msra.gmra.mxu0 %vm168_vm1, %v569_v23 }
 0x231   :  { %v1051_v25 = vpop.f32.mrf.mxu1 }
 0x232   :  { %v249_v27 = vadd.f32 %v1051_v25, %v1335_v24 }
 0x233   :  { %v243_v29 = vpop.f32.mrf.mxu1 }
 0x234   :  { %v244_v30 = vadd.f32 %v243_v29, %v1337_v26  ;;  %v256_v31 = vsel %vm252_vm2, %v249_v27, -inf }
 0x235   :  { %257 = vmax.xlane.f32.xlu1 %v256_v31  ;;  %v1065_v32 = vpop.f32.mrf.mxu0 }
 0x236   :  { %v253_v33 = vsel %vm252_vm2, %v244_v30, -inf  ;;  %v452_v36 = vadd.f32 %v1065_v32, %v1335_v24 }
 0x237   :  { %254 = vmax.xlane.f32.xlu0 %v253_v33  ;;  %v446_v34 = vpop.f32.mrf.mxu0 }
 0x238   :  { %v447_v35 = vadd.f32 %v446_v34, %v1337_v26  ;;  %v458_v40 = vsel %vm252_vm2, %v452_v36, -inf }
 0x23a   :  { %v455_v37 = vsel %vm252_vm2, %v447_v35, -inf }
 0x23b   :  { %456 = vmax.xlane.f32.xlu0 %v455_v37 }
 0x23d   :  { %v1079_v38 = vpop.f32.mrf.mxu0 }
 0x23e   :  { %v654_v39 = vadd.f32 %v1079_v38, %v1335_v24 }
 0x23f   :  { %459 = vmax.xlane.f32.xlu0 %v458_v40  ;;  %v648_v42 = vpop.f32.mrf.mxu0 }
 0x240   :  { %v660_v41 = vsel %vm252_vm2, %v654_v39, -inf  ;;  %v649_v43 = vadd.f32 %v648_v42, %v1337_v26  ;;  %v988_v42 = vld [vmem:[%s1408_s2] ss:$0 sm:$0xff]  ;;  %s1254_s2 = smov [#allocation8]  }
 0x241   :  { %s973_s16 = sshll.u32 %s1254_s2, 4  ;;  %s974_s16 = int_to_ptr.vmem [resolvable:$true] %s973_s16 }
 0x242   :  { %v657_v44 = vsel %vm252_vm2, %v649_v43, -inf  ;;  %s1211_s17 = scalar_lea.vmem %s974_s16, 256  ;;  %p1216_p2 = scmp.lt.s32.totalorder %s974_s16, %s974_s16 }
 0x243   :  { %661 = vmax.xlane.f32.xlu0 %v660_v41  ;;  %p1212_p1 = scmp.ne.s32.totalorder %s974_s16, %s1211_s17  ;;  %p1217_p3 = scmp.lt.s32.totalorder %s1211_s17, %s1211_s17 }
 0x245   :  { %p1218_p4 = por %p1217_p3, %p1216_p2 }
 0x246   :  { %277 = vrot.lane.b32.xlu1 %v1305_v13, %s1250_s10 }
 0x247   :  { %p1219_p5 = pnand %p1218_p4, %p1212_p1 }
 0x24a   :  { %479 = vrot.lane.b32.xlu1 %v1305_v13, %s1251_s11 }
 0x259   :  { %275 = vrot.lane.b32.xlu0 %v1297_v11, %s1250_s10 }
 0x26e   :  { %658 = vmax.xlane.f32.xlu1 %v657_v44 }
 0x27f   :  { %477 = vrot.lane.b32.xlu1 %v1297_v11, %s1251_s11 }
 0x2be   :  { %v258_v45 = vpop.xlane.xlu1 %257 }
 0x2bf   :  { %v260_v46 = vsub.f32 %v249_v27, %v258_v45 }
 0x2c0   :  { %v255_v47 = vpop.xlane.xlu0 %254 }
 0x2c1   :  { %v263_v48 = vmul.f32 1.442695, %v260_v46  ;;  %v259_v49 = vsub.f32 %v244_v30, %v255_v47 }
 0x2c2   :  { %v278_v50 = vpop.permute.xlu1 %277 }
 0x2c3   :  { %1119 = vpow2.f32 %v263_v48  ;;  %v261_v51 = vmul.f32 1.442695, %v259_v49  ;;  %1052 = vmatprep.subr.mxu1 %v278_v50 }
 0x2c4   :  { %1053 = vmatpush3.msra.mxu1 %v278_v50  ;;  %v457_v52 = vpop.xlane.xlu0 %456 }
 0x2c5   :  { %1121 = vpow2.f32 %v261_v51  ;;  %v461_v53 = vsub.f32 %v447_v35, %v457_v52 }
 0x2c6   :  { %v480_v1 = vpop.permute.xlu1 %479 }
 0x2c7   :  { %v463_v54 = vmul.f32 1.442695, %v461_v53 }
 0x2c8   :  { %v460_v55 = vpop.xlane.xlu0 %459 }
 0x2c9   :  { %1123 = vpow2.f32 %v463_v54  ;;  %v462_v56 = vsub.f32 %v452_v36, %v460_v55 }
 0x2cb   :  { %v465_v57 = vmul.f32 1.442695, %v462_v56 }
 0x2cc   :  { %v662_v58 = vpop.xlane.xlu0 %661 }
 0x2cd   :  { %1125 = vpow2.f32 %v465_v57  ;;  %v664_v59 = vsub.f32 %v654_v39, %v662_v58 }
 0x2cf   :  { %v667_v60 = vmul.f32 1.442695, %v664_v59 }
 0x2d0   :  { %v1120_v61 = vpop.eup %1119  ;;  %v276_v62 = vpop.permute.xlu0 %275 }
 0x2d1   :  { %1127 = vpow2.f32 %v667_v60  ;;  %1054 = vmatprep.subr.mxu1 %v276_v62  ;;  %v268_v63 = vsel %vm252_vm2, %v1120_v61, 0.0 }
 0x2d2   :  { %v1122_v0 = vpop.eup %1121  ;;  %269 = vadd.xlane.f32.xlu0 %v268_v63  ;;  %1055 = vmatpush3.msra.mxu1 %v276_v62 }
 0x2d3   :  { %1066 = vmatprep.subr.mxu1 %v480_v1  ;;  %v265_v2 = vsel %vm252_vm2, %v1122_v0, 0.0 }
 0x2d4   :  { %266 = vadd.xlane.f32.xlu1 %v265_v2 }
 0x2d6   :  { %v1124_v3 = vpop.eup %1123 }
 0x2d7   :  { %v467_v4 = vsel %vm252_vm2, %v1124_v3, 0.0 }
 0x2d8   :  { %468 = vadd.xlane.f32.xlu1 %v467_v4 }
 0x2da   :  { %v1126_v5 = vpop.eup %1125 }
 0x2db   :  { %v470_v6 = vsel %vm252_vm2, %v1126_v5, 0.0 }
 0x2dc   :  { %471 = vadd.xlane.f32.xlu0 %v470_v6 }
 0x2de   :  { %v1128_v7 = vpop.eup %1127 }
 0x2df   :  { %v672_v8 = vsel %vm252_vm2, %v1128_v7, 0.0 }
 0x2e0   :  { %673 = vadd.xlane.f32.xlu0 %v672_v8 }
 0x2e9   :  { %766 = vrot.lane.b32.xlu1 %v1297_v11, %s1252_s12 }
 0x2f6   :  { %768 = vrot.lane.b32.xlu0 %v1305_v13, %s1252_s12 }
 0x2f7   :  { %v659_v9 = vpop.xlane.xlu1 %658 }
 0x2f8   :  { %v663_v10 = vsub.f32 %v649_v43, %v659_v9 }
 0x2fa   :  { %v665_v14 = vmul.f32 1.442695, %v663_v10  ;;  %762 = vrot.lane.b32.xlu0 %v1297_v11, %s1253_s13 }
 0x2fb   :  { %v478_v17 = vpop.permute.xlu1 %477 }
 0x2fc   :  { %1129 = vpow2.f32 %v665_v14 }
 0x309   :  { %v1130_v15 = vpop.eup %1129 }
 0x30a   :  { %v669_v16 = vsel %vm252_vm2, %v1130_v15, 0.0 }
 0x30d   :  { %670 = vadd.xlane.f32.xlu1 %v669_v16 }
 0x31e   :  { %764 = vrot.lane.b32.xlu1 %v1305_v13, %s1253_s13 }
 0x35b   :  { %v270_v18 = vpop.xlane.xlu0 %269 }
 0x35c   :  { %1131 = vrcp.f32 %v270_v18 }
 0x35d   :  { %v267_v19 = vpop.xlane.xlu1 %266 }
 0x35e   :  { %1133 = vrcp.f32 %v267_v19 }
 0x361   :  { %v469_v20 = vpop.xlane.xlu1 %468 }
 0x362   :  { %1135 = vrcp.f32 %v469_v20 }
 0x365   :  { %v472_v21 = vpop.xlane.xlu0 %471  ;;  %v767_v33 = vpop.permute.xlu1 %766 }
 0x366   :  { %1137 = vrcp.f32 %v472_v21 }
 0x369   :  { %v1132_v22 = vpop.eup %1131  ;;  %v674_v30 = vpop.xlane.xlu0 %673 }
 0x36a   :  { %v274_v11 = vmul.f32 %v1132_v22, %v1120_v61  ;;  %1139 = vrcp.f32 %v674_v30 }
 0x36b   :  { %v1134_v23 = vpop.eup %1133 }
 0x36c   :  { %v273_v25 = vmul.f32 %v1134_v23, %v1122_v0 }
 0x36d   :  { %v769_v32 = vpop.permute.xlu0 %768 }
 0x36e   :  { %1056 = vmatprep.mubr.msk.f32.mxu1 %vm252_vm2, %v273_v25 }
 0x36f   :  { %v1136_v27 = vpop.eup %1135  ;;  %1057 = vmatmul.mubr.msk.f32.vlgmr.msra.gmra.mxu1 %vm252_vm2, %v274_v11 }
 0x370   :  { %1067 = vmatpush3.msra.mxu1 %v480_v1  ;;  %v475_v13 = vmul.f32 %v1136_v27, %v1124_v3 }
 0x371   :  { %1068 = vmatprep.subr.mxu1 %v478_v17  ;;  %v763_v39 = vpop.permute.xlu0 %762 }
 0x372   :  { %1069 = vmatpush3.msra.mxu1 %v478_v17  ;;  %1070 = vmatprep.mubr.msk.f32.mxu1 %vm252_vm2, %v475_v13 }
 0x373   :  { %v1138_v29 = vpop.eup %1137  ;;  %1080 = vmatprep.subr.mxu1 %v1340_v28 }
 0x374   :  { %v476_v31 = vmul.f32 %v1138_v29, %v1126_v5 }
 0x376   :  { %1071 = vmatmul.mubr.msk.f32.vlgmr.msra.gmra.mxu1 %vm252_vm2, %v476_v31 }
 0x377   :  { %1081 = vmatpush3.msra.mxu1 %v1340_v28  ;;  %v1140_v35 = vpop.eup %1139 }
 0x378   :  { %1082 = vmatprep.subr.mxu1 %v1303_v12  ;;  %v678_v38 = vmul.f32 %v1140_v35, %v1128_v7 }
 0x379   :  { %1083 = vmatpush3.msra.mxu1 %v1303_v12 }
 0x37a   :  { %1087 = vmatprep.subr.msk.mxu1 %vm168_vm1, %v769_v32 }
 0x396   :  { %v671_v34 = vpop.xlane.xlu1 %670 }
 0x397   :  { %1141 = vrcp.f32 %v671_v34 }
 0x39a   :  { %v765_v40 = vpop.permute.xlu1 %764 }
 0x3a4   :  { %v1142_v36 = vpop.eup %1141 }
 0x3a5   :  { %v677_v37 = vmul.f32 %v1142_v36, %v1130_v15 }
 0x3a7   :  { %1084 = vmatprep.mubr.msk.f32.mxu1 %vm252_vm2, %v677_v37 }
 0x3a8   :  { %1085 = vmatmul.mubr.msk.f32.vlgmr.msra.gmra.mxu1 %vm252_vm2, %v678_v38 }
 0x3a9   :  { %1088 = vmatpush3.xpose.msk.msra.mxu1 %vm168_vm1, %v769_v32  ;;  %1091 = vmatprep.mubr.msk.f32.mxu1 %vm168_vm1, %v763_v39 }
 0x3aa   :  { %1089 = vmatprep.subr.msk.mxu1 %vm168_vm1, %v767_v33 }
 0x3ad   :  { %1090 = vmatpush3.xpose.msk.msra.mxu1 %vm168_vm1, %v767_v33 }
 0x3b0   :  { %1092 = vmatmul.mubr.msk.f32.vlgmr.msra.gmra.mxu1 %vm168_vm1, %v765_v40 }
 0x42f   :  { %v1058_v41 = vpop.f32.mrf.mxu1 }
 0x430   :  { %v363_v44 = vadd.f32 %v1058_v41, %v988_v42 }
 0x431   :  { %v353_v43 = vpop.f32.mrf.mxu1 }
 0x432   :  { %v362_v46 = vadd.f32 %v988_v42, %v353_v43 }
 0x436   :  { %v1072_v45 = vpop.f32.mrf.mxu1 }
 0x437   :  { %v565_v47 = vadd.f32 %v1072_v45, %v363_v44 }
 0x438   :  { %v555_v48 = vpop.f32.mrf.mxu1 }
 0x439   :  { %v564_v49 = vadd.f32 %v555_v48, %v362_v46 }
 0x468   :  { %v1086_v50 = vpop.f32.mrf.mxu1 }
 0x469   :  { %v761_v51 = vadd.f32 %v1086_v50, %v565_v47 }
 0x46a   :  { %v751_v52 = vpop.f32.mrf.mxu1 }
 0x46b   :  { %v760_v53 = vadd.f32 %v751_v52, %v564_v49 }
 0x470   :  { %v1093_v54 = vpop.f32.mrf.mxu1 }
 0x471   :  { %v850_v55 = vadd.f32 %v1093_v54, %v1335_v24 }
 0x472   :  { %v844_v56 = vpop.f32.mrf.mxu1 }
 0x473   :  { %v845_v57 = vadd.f32 %v844_v56, %v1337_v26  ;;  %v856_v58 = vsel %vm252_vm2, %v850_v55, -inf }
 0x474   :  { %857 = vmax.xlane.f32.xlu1 %v856_v58 }
 0x475   :  { %v853_v59 = vsel %vm252_vm2, %v845_v57, -inf }
 0x476   :  { %854 = vmax.xlane.f32.xlu0 %v853_v59 }
 0x485   :  { %879 = vrot.lane.b32.xlu1 %v1340_v28, %s1245_s0 }
 0x4fd   :  { %v858_v60 = vpop.xlane.xlu1 %857 }
 0x4fe   :  { %v860_v61 = vsub.f32 %v850_v55, %v858_v60 }
 0x4ff   :  { %v855_v62 = vpop.xlane.xlu0 %854 }
 0x500   :  { %v863_v63 = vmul.f32 1.442695, %v860_v61  ;;  %v859_v0 = vsub.f32 %v845_v57, %v855_v62 }
 0x501   :  { %v880_v1 = vpop.permute.xlu1 %879 }
 0x502   :  { %1143 = vpow2.f32 %v863_v63  ;;  %v861_v24 = vmul.f32 1.442695, %v859_v0  ;;  %1094 = vmatprep.subr.mxu0 %v880_v1 }
 0x503   :  { %1095 = vmatpush3.msra.mxu0 %v880_v1 }
 0x504   :  { %1145 = vpow2.f32 %v861_v24 }
 0x50f   :  { %v1144_v26 = vpop.eup %1143 }
 0x510   :  { %v868_v2 = vsel %vm252_vm2, %v1144_v26, 0.0 }
 0x511   :  { %v1146_v3 = vpop.eup %1145  ;;  %869 = vadd.xlane.f32.xlu0 %v868_v2 }
 0x512   :  { %v865_v4 = vsel %vm252_vm2, %v1146_v3, 0.0 }
 0x515   :  { %866 = vadd.xlane.f32.xlu0 %v865_v4 }
 0x52b   :  { %877 = vrot.lane.b32.xlu0 %v1303_v12, %s1245_s0 }
 0x59a   :  { %v870_v28 = vpop.xlane.xlu0 %869 }
 0x59b   :  { %1147 = vrcp.f32 %v870_v28 }
 0x59e   :  { %v867_v5 = vpop.xlane.xlu0 %866 }
 0x59f   :  { %1149 = vrcp.f32 %v867_v5 }
 0x5a2   :  { %v878_v6 = vpop.permute.xlu0 %877 }
 0x5a3   :  { %1096 = vmatprep.subr.mxu0 %v878_v6 }
 0x5a4   :  { %1097 = vmatpush3.msra.mxu0 %v878_v6 }
 0x5a8   :  { %v1148_v7 = vpop.eup %1147 }
 0x5a9   :  { %v874_v10 = vmul.f32 %v1148_v7, %v1144_v26 }
 0x5ac   :  { %v1150_v8 = vpop.eup %1149 }
 0x5ad   :  { %v873_v9 = vmul.f32 %v1150_v8, %v1146_v3 }
 0x5af   :  { %1098 = vmatprep.mubr.msk.f32.mxu0 %vm252_vm2, %v873_v9 }
 0x5b0   :  { %1099 = vmatmul.mubr.msk.f32.vlgmr.msra.gmra.mxu0 %vm252_vm2, %v874_v10 }
 0x670   :  { %v1100_v14 = vpop.f32.mrf.mxu0 }
 0x671   :  { %v965_v15 = vadd.f32 %v1100_v14, %v761_v51 }
 0x672   :  { %v955_v12 = vpop.f32.mrf.mxu0 }
 0x673   :  { %967 = vst.msk [vmem:[#allocation8 + $0x8] sm:$0xff] %vm69_vm0, %v965_v15  ;;  %v964_v16 = vadd.f32 %v955_v12, %v760_v53 }
 0x675   :  { %966 = vst.msk [vmem:[#allocation8] sm:$0xff] %vm69_vm0, %v964_v16 }
 0x676   :  { %1222 = shalt.err (!%p1219_p5)
}
 0x677   :  { %979 = dma.vmem_to_hbm [thread:$0]  %s974_s16, 256, %s1410_s4, [#allocation4], %s1241_s25, %s1241_s25, %s1242_s26  }
 0x678   :  { %1235 = dma.done.wait [#allocation4], 256  }
 0x679   :  { %1236 = vsyncadd [#allocation4], 4294967040 }
 0x67a   :  { %983 = vsyncpa [#allocation3], 1 }
 0x67b   :  { %984 = vsyncpa [#allocation6], 1 }
 0x67c   :  { %985 = vsyncpa [#allocation4], 1 }

</bundles_post_ra>
